<compile_context>
chip_gen: v6e
topology: v6e:2x2x1
jax: 0.10.0
libtpu: 0.0.40
codegen_flags: <defaults>
</compile_context>

<pallas_src>
import functools

import jax
import jax.numpy as jnp
import numpy as np
from jax.experimental import pallas as pl
from jax.experimental.pallas import tpu as pltpu

_MiB = 1024 * 1024
_ROW_CHUNK = 256   # node-row chunk for the final contraction (bounds vreg pressure)


def sem_attn_kernel(h_ref, w1_ref, w2_ref, hout_ref, attn_ref, *, approx_recip=True):
    # h_ref:    (R, tn, D)   w1_ref: (R, D, A)   w2_ref: (R, A, R)
    # hout_ref: (tn, R*D)    attn_ref: (tn, R*R)   (final node-major layouts)
    R, tn, D = h_ref.shape

    # --- scores per relation: s_r = tanh(h_r @ W1_r) @ W2_r  -> (tn, R) f32 ---
    # Native-dtype operands straight into the MXU (bf16 path when fed bf16),
    # f32 accumulation via preferred_element_type. W2 is tiny -> f32 upcast free.
    s_list = []
    for r in range(R):
        t_r = jnp.tanh(jnp.dot(h_ref[r], w1_ref[r],
                               preferred_element_type=jnp.float32))
        s_list.append(jnp.dot(t_r, w2_ref[r].astype(jnp.float32),
                              preferred_element_type=jnp.float32))

    # --- softmax over the relation axis (== torch.softmax(s, dim=0)) ---
    m = s_list[0]
    for r in range(1, R):
        m = jnp.maximum(m, s_list[r])
    e_list = [jnp.exp(s_r - m) for s_r in s_list]
    denom = e_list[0]
    for r in range(1, R):
        denom = denom + e_list[r]
    inv = pl.reciprocal(denom, approx=approx_recip)   # approx=True -> EUP vrcp path
    p_list = [e_r * inv for e_r in e_list]            # p_list[i][n, j], f32

    # attention in its final flattened layout: attn[n, i*R + j] = p_i[n, j]
    for i in range(R):
        attn_ref[:, i * R:(i + 1) * R] = p_list[i].astype(attn_ref.dtype)
    # TODO(synk): dropout is identity for p=0.0 / eval mode; a nonzero-p training
    # dropout would need pltpu.prng_seed + pltpu.prng_random_bits here.

    # --- h_out[n, i*D + d] = sum_j p_i[n, j] * h[j, n, d] ---
    # R*R broadcast-mul-adds on (chunk, D) slabs (pure VPU work, contraction
    # length is only R). Chunked over node rows so the f32 accumulator and the
    # h slabs (re-read from the VMEM ref per chunk) stay resident in vregs.
    for c0 in range(0, tn, _ROW_CHUNK):
        csz = min(_ROW_CHUNK, tn - c0)
        for i in range(R):
            p_i = p_list[i]
            acc = p_i[c0:c0 + csz, 0:1] * h_ref[0, c0:c0 + csz, :]
            for j in range(1, R):
                acc = acc + p_i[c0:c0 + csz, j:j + 1] * h_ref[j, c0:c0 + csz, :]
            hout_ref[c0:c0 + csz, i * D:(i + 1) * D] = acc.astype(hout_ref.dtype)


def _round_up(x, m):
    return ((x + m - 1) // m) * m


def _vmem_capacity_bytes():
    try:
        cap = int(getattr(pltpu.get_tpu_info(), "vmem_capacity_bytes", 0) or 0)
        if cap > 0:
            return cap
    except Exception:
        pass
    return 64 * _MiB      # conservative default (v7x per-TensorCore VMEM)


def _plan(N, R, D, A, in_dtype, w_dtype, out_dtype, max_tile):
    """Pick the node tile size and an explicit scoped-VMEM limit."""
    in_b = np.dtype(in_dtype).itemsize
    w_b = np.dtype(w_dtype).itemsize
    out_b = np.dtype(out_dtype).itemsize

    cap = _vmem_capacity_bytes()
    budget = max(24 * _MiB, cap - 16 * _MiB)     # headroom for compiler scratch

    # Steady-state VMEM per node row: double-buffered h / h_out / attn pipeline
    # tiles + f32 score/softmax temporaries + one f32 accumulator slab.
    per_row = (2 * R * D * in_b
               + 2 * R * D * out_b
               + 2 * R * R * out_b
               + 4 * R * (A + 4 * R)
               + 4 * D)
    fixed = 2 * R * A * (D + R) * w_b            # resident W1 + W2 buffers

    rows = max(256, (budget - fixed) // per_row)
    tile_cap = max(256, min(max_tile, (rows // 256) * 256))

    if N <= tile_cap and N < 512:
        tile_n = N        # one (or few) blocks; "== full array dim" is always legal
    else:
        # Enough rows to split: aim for >= 4 grid steps (feeds both v7x
        # TensorCores, keeps the DMA pipeline busy); a multiple of 256 keeps the
        # (8,128) tiling and the in-kernel row chunking aligned.
        tile_n = max(256, min(tile_cap, _round_up(pl.cdiv(N, 4), 256)))

    vmem_limit = int(min(cap, max(32 * _MiB, fixed + per_row * tile_n + 8 * _MiB)))
    return tile_n, vmem_limit


def semantic_attention(h, w1, w2, *, out_dtype=None, max_tile=2048, approx_recip=True):
    """h: (R, N, D), w1: (R, D, A), w2: (R, A, R).

    Returns (h_out (N, R, D), attention (N, R, R)), matching the PyTorch module
    with return_attn=True. Feed bf16 h/W1/W2 (out_dtype then defaults to bf16)
    to halve HBM traffic on this bandwidth-bound kernel.
    """
    R, N, D = h.shape
    A = w1.shape[-1]
    out_dtype = h.dtype if out_dtype is None else np.dtype(out_dtype)

    tile_n, vmem_limit = _plan(N, R, D, A, h.dtype, w1.dtype, out_dtype, max_tile)
    grid_n = pl.cdiv(N, tile_n)

    hout_flat, attn_flat = pl.pallas_call(
        functools.partial(sem_attn_kernel, approx_recip=approx_recip),
        out_shape=(
            jax.ShapeDtypeStruct((N, R * D), out_dtype),   # h_out, final layout
            jax.ShapeDtypeStruct((N, R * R), out_dtype),   # attention, final layout
        ),
        grid_spec=pltpu.PrefetchScalarGridSpec(
            num_scalar_prefetch=0,
            grid=(grid_n,),
            in_specs=[
                pl.BlockSpec((R, tile_n, D), lambda i: (0, i, 0)),  # h, tiled over N
                pl.BlockSpec((R, D, A), lambda i: (0, 0, 0)),       # W1 (resident)
                pl.BlockSpec((R, A, R), lambda i: (0, 0, 0)),       # W2 (resident)
            ],
            out_specs=(
                pl.BlockSpec((tile_n, R * D), lambda i: (i, 0)),
                pl.BlockSpec((tile_n, R * R), lambda i: (i, 0)),
            ),
        ),
        compiler_params=pltpu.CompilerParams(
            dimension_semantics=("parallel",),
            vmem_limit_bytes=vmem_limit,
        ),
    )(h, w1, w2)

    # Row-major reshapes are free (no data movement), unlike the previous
    # version's post-kernel transposes.
    return hout_flat.reshape(N, R, D), attn_flat.reshape(N, R, R)


def _xavier_uniform(key, shape, gain=1.0):
    # Matches torch.nn.init.xavier_uniform_ fan computation for 3-D tensors.
    receptive = int(np.prod(shape[2:])) if len(shape) > 2 else 1
    fan_in = shape[1] * receptive
    fan_out = shape[0] * receptive
    bound = gain * float(np.sqrt(6.0 / (fan_in + fan_out)))
    return jax.random.uniform(key, shape, jnp.float32, -bound, bound)


def _reference(h, w1, w2):
    # Pure-JAX reference mirroring the PyTorch forward.
    s = jnp.einsum("rnd,rda->rna", h, w1)
    s = jnp.einsum("rna,rak->rnk", jnp.tanh(s), w2)
    attn = jax.nn.softmax(s, axis=0).transpose(1, 0, 2)
    out = jnp.einsum("nij,njd->nid", attn, h.transpose(1, 0, 2))
    return out, attn


if __name__ == "__main__":
    R, N, D, A = 4, 16, 32, 16   # num_relations, nodes, in_dim, dim_a

    key = jax.random.PRNGKey(0)
    k_h, k_w1, k_w2 = jax.random.split(key, 3)

    h = jax.random.normal(k_h, (R, N, D), jnp.float32)
    gain_tanh = 5.0 / 3.0        # nn.init.calculate_gain('tanh')
    w1 = _xavier_uniform(k_w1, (R, D, A), gain=gain_tanh)
    w2 = _xavier_uniform(k_w2, (R, A, R), gain=1.0)

    # f32 run; tolerance loosened from 1e-5 only because the softmax
    # denominator now goes through the approximate EUP reciprocal.
    h_out, attn = semantic_attention(h, w1, w2)
    jax.block_until_ready((h_out, attn))
    h_ref, attn_ref = _reference(h, w1, w2)
    np.testing.assert_allclose(np.asarray(h_out), np.asarray(h_ref),
                               rtol=2e-2, atol=2e-2)
    np.testing.assert_allclose(np.asarray(attn), np.asarray(attn_ref),
                               rtol=2e-2, atol=2e-2)

    # bf16 run: halves HBM read/write traffic. Checked against an f32 reference
    # evaluated on the same bf16-quantized inputs (removes input-quantization
    # noise from the comparison; remaining error is bf16 output rounding).
    h_bf, w1_bf, w2_bf = (x.astype(jnp.bfloat16) for x in (h, w1, w2))
    h_out_bf, attn_bf = semantic_attention(h_bf, w1_bf, w2_bf)
    jax.block_until_ready((h_out_bf, attn_bf))
    h_ref_bf, attn_ref_bf = _reference(
        *(x.astype(jnp.float32) for x in (h_bf, w1_bf, w2_bf)))
    np.testing.assert_allclose(np.asarray(h_out_bf.astype(jnp.float32)),
                               np.asarray(h_ref_bf), rtol=5e-2, atol=5e-2)
    np.testing.assert_allclose(np.asarray(attn_bf.astype(jnp.float32)),
                               np.asarray(attn_ref_bf), rtol=5e-2, atol=5e-2)

    print("KERNEL_OK")
</pallas_src>

<mosaic_0001>
module attributes {stable_mosaic.version = 11 : i64} {
  func.func @sem_attn_kernel(%arg0: i32, %arg1: memref<4x16x32xf32, #tpu.memory_space<vmem>>, %arg2: memref<4x32x16xf32, #tpu.memory_space<vmem>>, %arg3: memref<4x16x4xf32, #tpu.memory_space<vmem>>, %arg4: memref<16x128xf32, #tpu.memory_space<vmem>>, %arg5: memref<16x16xf32, #tpu.memory_space<vmem>>) attributes {dimension_semantics = [#tpu.dimension_semantics<parallel>], iteration_bounds = array<i64: 1>, scalar_prefetch = 0 : i64, scratch_operands = 0 : i64, tpu.core_type = #tpu.core_type<tc>, window_params = [{transform_indices = @transform_0, window_bounds = array<i64: 4, 16, 32>}, {pipeline_mode = #tpu.pipeline_mode<synchronous>, transform_indices = @transform_1, window_bounds = array<i64: 4, 32, 16>}, {pipeline_mode = #tpu.pipeline_mode<synchronous>, transform_indices = @transform_2, window_bounds = array<i64: 4, 16, 4>}, {transform_indices = @transform_3, window_bounds = array<i64: 16, 128>}, {transform_indices = @transform_4, window_bounds = array<i64: 16, 16>}]} {
    %c0 = arith.constant 0 : index
    %c0_0 = arith.constant 0 : index
    %c0_1 = arith.constant 0 : index
    %0 = vector.load %arg1[%c0, %c0_0, %c0_1] : memref<4x16x32xf32, #tpu.memory_space<vmem>>, vector<1x16x32xf32>
    %1 = vector.shape_cast %0 : vector<1x16x32xf32> to vector<16x32xf32>
    %c0_2 = arith.constant 0 : index
    %c0_3 = arith.constant 0 : index
    %c0_4 = arith.constant 0 : index
    %2 = vector.load %arg2[%c0_2, %c0_3, %c0_4] : memref<4x32x16xf32, #tpu.memory_space<vmem>>, vector<1x32x16xf32>
    %3 = vector.shape_cast %2 : vector<1x32x16xf32> to vector<32x16xf32>
    %cst = arith.constant dense<0.000000e+00> : vector<16x16xf32>
    %4 = tpu.matmul %1, %3, %cst {dimension_numbers = #tpu.dot_dimension_numbers<[1], [0], [0], [1], [0, 0, 1, 1], [], []>} : vector<16x32xf32>, vector<32x16xf32>, vector<16x16xf32> -> vector<16x16xf32>
    %5 = math.tanh %4 : vector<16x16xf32>
    %c0_5 = arith.constant 0 : index
    %c0_6 = arith.constant 0 : index
    %c0_7 = arith.constant 0 : index
    %6 = vector.load %arg3[%c0_5, %c0_6, %c0_7] : memref<4x16x4xf32, #tpu.memory_space<vmem>>, vector<1x16x4xf32>
    %7 = vector.shape_cast %6 : vector<1x16x4xf32> to vector<16x4xf32>
    %cst_8 = arith.constant dense<0.000000e+00> : vector<16x4xf32>
    %8 = tpu.matmul %5, %7, %cst_8 {dimension_numbers = #tpu.dot_dimension_numbers<[1], [0], [0], [1], [0, 0, 1, 1], [], []>} : vector<16x16xf32>, vector<16x4xf32>, vector<16x4xf32> -> vector<16x4xf32>
    %c1 = arith.constant 1 : index
    %c0_9 = arith.constant 0 : index
    %c0_10 = arith.constant 0 : index
    %9 = vector.load %arg1[%c1, %c0_9, %c0_10] : memref<4x16x32xf32, #tpu.memory_space<vmem>>, vector<1x16x32xf32>
    %10 = vector.shape_cast %9 : vector<1x16x32xf32> to vector<16x32xf32>
    %c1_11 = arith.constant 1 : index
    %c0_12 = arith.constant 0 : index
    %c0_13 = arith.constant 0 : index
    %11 = vector.load %arg2[%c1_11, %c0_12, %c0_13] : memref<4x32x16xf32, #tpu.memory_space<vmem>>, vector<1x32x16xf32>
    %12 = vector.shape_cast %11 : vector<1x32x16xf32> to vector<32x16xf32>
    %cst_14 = arith.constant dense<0.000000e+00> : vector<16x16xf32>
    %13 = tpu.matmul %10, %12, %cst_14 {dimension_numbers = #tpu.dot_dimension_numbers<[1], [0], [0], [1], [0, 0, 1, 1], [], []>} : vector<16x32xf32>, vector<32x16xf32>, vector<16x16xf32> -> vector<16x16xf32>
    %14 = math.tanh %13 : vector<16x16xf32>
    %c1_15 = arith.constant 1 : index
    %c0_16 = arith.constant 0 : index
    %c0_17 = arith.constant 0 : index
    %15 = vector.load %arg3[%c1_15, %c0_16, %c0_17] : memref<4x16x4xf32, #tpu.memory_space<vmem>>, vector<1x16x4xf32>
    %16 = vector.shape_cast %15 : vector<1x16x4xf32> to vector<16x4xf32>
    %cst_18 = arith.constant dense<0.000000e+00> : vector<16x4xf32>
    %17 = tpu.matmul %14, %16, %cst_18 {dimension_numbers = #tpu.dot_dimension_numbers<[1], [0], [0], [1], [0, 0, 1, 1], [], []>} : vector<16x16xf32>, vector<16x4xf32>, vector<16x4xf32> -> vector<16x4xf32>
    %c2 = arith.constant 2 : index
    %c0_19 = arith.constant 0 : index
    %c0_20 = arith.constant 0 : index
    %18 = vector.load %arg1[%c2, %c0_19, %c0_20] : memref<4x16x32xf32, #tpu.memory_space<vmem>>, vector<1x16x32xf32>
    %19 = vector.shape_cast %18 : vector<1x16x32xf32> to vector<16x32xf32>
    %c2_21 = arith.constant 2 : index
    %c0_22 = arith.constant 0 : index
    %c0_23 = arith.constant 0 : index
    %20 = vector.load %arg2[%c2_21, %c0_22, %c0_23] : memref<4x32x16xf32, #tpu.memory_space<vmem>>, vector<1x32x16xf32>
    %21 = vector.shape_cast %20 : vector<1x32x16xf32> to vector<32x16xf32>
    %cst_24 = arith.constant dense<0.000000e+00> : vector<16x16xf32>
    %22 = tpu.matmul %19, %21, %cst_24 {dimension_numbers = #tpu.dot_dimension_numbers<[1], [0], [0], [1], [0, 0, 1, 1], [], []>} : vector<16x32xf32>, vector<32x16xf32>, vector<16x16xf32> -> vector<16x16xf32>
    %23 = math.tanh %22 : vector<16x16xf32>
    %c2_25 = arith.constant 2 : index
    %c0_26 = arith.constant 0 : index
    %c0_27 = arith.constant 0 : index
    %24 = vector.load %arg3[%c2_25, %c0_26, %c0_27] : memref<4x16x4xf32, #tpu.memory_space<vmem>>, vector<1x16x4xf32>
    %25 = vector.shape_cast %24 : vector<1x16x4xf32> to vector<16x4xf32>
    %cst_28 = arith.constant dense<0.000000e+00> : vector<16x4xf32>
    %26 = tpu.matmul %23, %25, %cst_28 {dimension_numbers = #tpu.dot_dimension_numbers<[1], [0], [0], [1], [0, 0, 1, 1], [], []>} : vector<16x16xf32>, vector<16x4xf32>, vector<16x4xf32> -> vector<16x4xf32>
    %c3 = arith.constant 3 : index
    %c0_29 = arith.constant 0 : index
    %c0_30 = arith.constant 0 : index
    %27 = vector.load %arg1[%c3, %c0_29, %c0_30] : memref<4x16x32xf32, #tpu.memory_space<vmem>>, vector<1x16x32xf32>
    %28 = vector.shape_cast %27 : vector<1x16x32xf32> to vector<16x32xf32>
    %c3_31 = arith.constant 3 : index
    %c0_32 = arith.constant 0 : index
    %c0_33 = arith.constant 0 : index
    %29 = vector.load %arg2[%c3_31, %c0_32, %c0_33] : memref<4x32x16xf32, #tpu.memory_space<vmem>>, vector<1x32x16xf32>
    %30 = vector.shape_cast %29 : vector<1x32x16xf32> to vector<32x16xf32>
    %cst_34 = arith.constant dense<0.000000e+00> : vector<16x16xf32>
    %31 = tpu.matmul %28, %30, %cst_34 {dimension_numbers = #tpu.dot_dimension_numbers<[1], [0], [0], [1], [0, 0, 1, 1], [], []>} : vector<16x32xf32>, vector<32x16xf32>, vector<16x16xf32> -> vector<16x16xf32>
    %32 = math.tanh %31 : vector<16x16xf32>
    %c3_35 = arith.constant 3 : index
    %c0_36 = arith.constant 0 : index
    %c0_37 = arith.constant 0 : index
    %33 = vector.load %arg3[%c3_35, %c0_36, %c0_37] : memref<4x16x4xf32, #tpu.memory_space<vmem>>, vector<1x16x4xf32>
    %34 = vector.shape_cast %33 : vector<1x16x4xf32> to vector<16x4xf32>
    %cst_38 = arith.constant dense<0.000000e+00> : vector<16x4xf32>
    %35 = tpu.matmul %32, %34, %cst_38 {dimension_numbers = #tpu.dot_dimension_numbers<[1], [0], [0], [1], [0, 0, 1, 1], [], []>} : vector<16x16xf32>, vector<16x4xf32>, vector<16x4xf32> -> vector<16x4xf32>
    %36 = arith.maximumf %8, %17 : vector<16x4xf32>
    %37 = arith.maximumf %36, %26 : vector<16x4xf32>
    %38 = arith.maximumf %37, %35 : vector<16x4xf32>
    %39 = arith.subf %8, %38 : vector<16x4xf32>
    %40 = math.exp %39 : vector<16x4xf32>
    %41 = arith.subf %17, %38 : vector<16x4xf32>
    %42 = math.exp %41 : vector<16x4xf32>
    %43 = arith.subf %26, %38 : vector<16x4xf32>
    %44 = math.exp %43 : vector<16x4xf32>
    %45 = arith.subf %35, %38 : vector<16x4xf32>
    %46 = math.exp %45 : vector<16x4xf32>
    %47 = arith.addf %40, %42 : vector<16x4xf32>
    %48 = arith.addf %47, %44 : vector<16x4xf32>
    %49 = arith.addf %48, %46 : vector<16x4xf32>
    %50 = tpu.reciprocal %49 {approx = true} : vector<16x4xf32> -> vector<16x4xf32>
    %51 = arith.mulf %40, %50 : vector<16x4xf32>
    %52 = arith.mulf %42, %50 : vector<16x4xf32>
    %53 = arith.mulf %44, %50 : vector<16x4xf32>
    %54 = arith.mulf %46, %50 : vector<16x4xf32>
    %c0_39 = arith.constant 0 : index
    %c0_40 = arith.constant 0 : index
    %55 = vector.load %arg5[%c0_39, %c0_40] : memref<16x16xf32, #tpu.memory_space<vmem>>, vector<16x4xf32>
    tpu.vector_store %arg5[%c0_39, %c0_40], %51 {strides = array<i32>} : memref<16x16xf32, #tpu.memory_space<vmem>>, vector<16x4xf32>,
    %c0_41 = arith.constant 0 : index
    %c4 = arith.constant 4 : index
    %56 = vector.load %arg5[%c0_41, %c4] : memref<16x16xf32, #tpu.memory_space<vmem>>, vector<16x4xf32>
    tpu.vector_store %arg5[%c0_41, %c4], %52 {strides = array<i32>} : memref<16x16xf32, #tpu.memory_space<vmem>>, vector<16x4xf32>,
    %c0_42 = arith.constant 0 : index
    %c8 = arith.constant 8 : index
    %57 = vector.load %arg5[%c0_42, %c8] : memref<16x16xf32, #tpu.memory_space<vmem>>, vector<16x4xf32>
    tpu.vector_store %arg5[%c0_42, %c8], %53 {strides = array<i32>} : memref<16x16xf32, #tpu.memory_space<vmem>>, vector<16x4xf32>,
    %c0_43 = arith.constant 0 : index
    %c12 = arith.constant 12 : index
    %58 = vector.load %arg5[%c0_43, %c12] : memref<16x16xf32, #tpu.memory_space<vmem>>, vector<16x4xf32>
    tpu.vector_store %arg5[%c0_43, %c12], %54 {strides = array<i32>} : memref<16x16xf32, #tpu.memory_space<vmem>>, vector<16x4xf32>,
    %59 = vector.extract_strided_slice %51 {offsets = [0, 0], sizes = [16, 1], strides = [1, 1]} : vector<16x4xf32> to vector<16x1xf32>
    %c0_44 = arith.constant 0 : index
    %c0_45 = arith.constant 0 : index
    %c0_46 = arith.constant 0 : index
    %60 = vector.load %arg1[%c0_44, %c0_45, %c0_46] : memref<4x16x32xf32, #tpu.memory_space<vmem>>, vector<1x16x32xf32>
    %61 = vector.shape_cast %60 : vector<1x16x32xf32> to vector<16x32xf32>
    %62 = vector.broadcast %59 : vector<16x1xf32> to vector<16x32xf32>
    %63 = arith.mulf %62, %61 : vector<16x32xf32>
    %64 = vector.extract_strided_slice %51 {offsets = [0, 1], sizes = [16, 1], strides = [1, 1]} : vector<16x4xf32> to vector<16x1xf32>
    %c1_47 = arith.constant 1 : index
    %c0_48 = arith.constant 0 : index
    %c0_49 = arith.constant 0 : index
    %65 = vector.load %arg1[%c1_47, %c0_48, %c0_49] : memref<4x16x32xf32, #tpu.memory_space<vmem>>, vector<1x16x32xf32>
    %66 = vector.shape_cast %65 : vector<1x16x32xf32> to vector<16x32xf32>
    %67 = vector.broadcast %64 : vector<16x1xf32> to vector<16x32xf32>
    %68 = arith.mulf %67, %66 : vector<16x32xf32>
    %69 = arith.addf %63, %68 : vector<16x32xf32>
    %70 = vector.extract_strided_slice %51 {offsets = [0, 2], sizes = [16, 1], strides = [1, 1]} : vector<16x4xf32> to vector<16x1xf32>
    %c2_50 = arith.constant 2 : index
    %c0_51 = arith.constant 0 : index
    %c0_52 = arith.constant 0 : index
    %71 = vector.load %arg1[%c2_50, %c0_51, %c0_52] : memref<4x16x32xf32, #tpu.memory_space<vmem>>, vector<1x16x32xf32>
    %72 = vector.shape_cast %71 : vector<1x16x32xf32> to vector<16x32xf32>
    %73 = vector.broadcast %70 : vector<16x1xf32> to vector<16x32xf32>
    %74 = arith.mulf %73, %72 : vector<16x32xf32>
    %75 = arith.addf %69, %74 : vector<16x32xf32>
    %76 = vector.extract_strided_slice %51 {offsets = [0, 3], sizes = [16, 1], strides = [1, 1]} : vector<16x4xf32> to vector<16x1xf32>
    %c3_53 = arith.constant 3 : index
    %c0_54 = arith.constant 0 : index
    %c0_55 = arith.constant 0 : index
    %77 = vector.load %arg1[%c3_53, %c0_54, %c0_55] : memref<4x16x32xf32, #tpu.memory_space<vmem>>, vector<1x16x32xf32>
    %78 = vector.shape_cast %77 : vector<1x16x32xf32> to vector<16x32xf32>
    %79 = vector.broadcast %76 : vector<16x1xf32> to vector<16x32xf32>
    %80 = arith.mulf %79, %78 : vector<16x32xf32>
    %81 = arith.addf %75, %80 : vector<16x32xf32>
    %c0_56 = arith.constant 0 : index
    %c0_57 = arith.constant 0 : index
    %82 = vector.load %arg4[%c0_56, %c0_57] : memref<16x128xf32, #tpu.memory_space<vmem>>, vector<16x32xf32>
    tpu.vector_store %arg4[%c0_56, %c0_57], %81 {strides = array<i32>} : memref<16x128xf32, #tpu.memory_space<vmem>>, vector<16x32xf32>,
    %83 = vector.extract_strided_slice %52 {offsets = [0, 0], sizes = [16, 1], strides = [1, 1]} : vector<16x4xf32> to vector<16x1xf32>
    %c0_58 = arith.constant 0 : index
    %c0_59 = arith.constant 0 : index
    %c0_60 = arith.constant 0 : index
    %84 = vector.load %arg1[%c0_58, %c0_59, %c0_60] : memref<4x16x32xf32, #tpu.memory_space<vmem>>, vector<1x16x32xf32>
    %85 = vector.shape_cast %84 : vector<1x16x32xf32> to vector<16x32xf32>
    %86 = vector.broadcast %83 : vector<16x1xf32> to vector<16x32xf32>
    %87 = arith.mulf %86, %85 : vector<16x32xf32>
    %88 = vector.extract_strided_slice %52 {offsets = [0, 1], sizes = [16, 1], strides = [1, 1]} : vector<16x4xf32> to vector<16x1xf32>
    %c1_61 = arith.constant 1 : index
    %c0_62 = arith.constant 0 : index
    %c0_63 = arith.constant 0 : index
    %89 = vector.load %arg1[%c1_61, %c0_62, %c0_63] : memref<4x16x32xf32, #tpu.memory_space<vmem>>, vector<1x16x32xf32>
    %90 = vector.shape_cast %89 : vector<1x16x32xf32> to vector<16x32xf32>
    %91 = vector.broadcast %88 : vector<16x1xf32> to vector<16x32xf32>
    %92 = arith.mulf %91, %90 : vector<16x32xf32>
    %93 = arith.addf %87, %92 : vector<16x32xf32>
    %94 = vector.extract_strided_slice %52 {offsets = [0, 2], sizes = [16, 1], strides = [1, 1]} : vector<16x4xf32> to vector<16x1xf32>
    %c2_64 = arith.constant 2 : index
    %c0_65 = arith.constant 0 : index
    %c0_66 = arith.constant 0 : index
    %95 = vector.load %arg1[%c2_64, %c0_65, %c0_66] : memref<4x16x32xf32, #tpu.memory_space<vmem>>, vector<1x16x32xf32>
    %96 = vector.shape_cast %95 : vector<1x16x32xf32> to vector<16x32xf32>
    %97 = vector.broadcast %94 : vector<16x1xf32> to vector<16x32xf32>
    %98 = arith.mulf %97, %96 : vector<16x32xf32>
    %99 = arith.addf %93, %98 : vector<16x32xf32>
    %100 = vector.extract_strided_slice %52 {offsets = [0, 3], sizes = [16, 1], strides = [1, 1]} : vector<16x4xf32> to vector<16x1xf32>
    %c3_67 = arith.constant 3 : index
    %c0_68 = arith.constant 0 : index
    %c0_69 = arith.constant 0 : index
    %101 = vector.load %arg1[%c3_67, %c0_68, %c0_69] : memref<4x16x32xf32, #tpu.memory_space<vmem>>, vector<1x16x32xf32>
    %102 = vector.shape_cast %101 : vector<1x16x32xf32> to vector<16x32xf32>
    %103 = vector.broadcast %100 : vector<16x1xf32> to vector<16x32xf32>
    %104 = arith.mulf %103, %102 : vector<16x32xf32>
    %105 = arith.addf %99, %104 : vector<16x32xf32>
    %c0_70 = arith.constant 0 : index
    %c32 = arith.constant 32 : index
    %106 = vector.load %arg4[%c0_70, %c32] : memref<16x128xf32, #tpu.memory_space<vmem>>, vector<16x32xf32>
    tpu.vector_store %arg4[%c0_70, %c32], %105 {strides = array<i32>} : memref<16x128xf32, #tpu.memory_space<vmem>>, vector<16x32xf32>,
    %107 = vector.extract_strided_slice %53 {offsets = [0, 0], sizes = [16, 1], strides = [1, 1]} : vector<16x4xf32> to vector<16x1xf32>
    %c0_71 = arith.constant 0 : index
    %c0_72 = arith.constant 0 : index
    %c0_73 = arith.constant 0 : index
    %108 = vector.load %arg1[%c0_71, %c0_72, %c0_73] : memref<4x16x32xf32, #tpu.memory_space<vmem>>, vector<1x16x32xf32>
    %109 = vector.shape_cast %108 : vector<1x16x32xf32> to vector<16x32xf32>
    %110 = vector.broadcast %107 : vector<16x1xf32> to vector<16x32xf32>
    %111 = arith.mulf %110, %109 : vector<16x32xf32>
    %112 = vector.extract_strided_slice %53 {offsets = [0, 1], sizes = [16, 1], strides = [1, 1]} : vector<16x4xf32> to vector<16x1xf32>
    %c1_74 = arith.constant 1 : index
    %c0_75 = arith.constant 0 : index
    %c0_76 = arith.constant 0 : index
    %113 = vector.load %arg1[%c1_74, %c0_75, %c0_76] : memref<4x16x32xf32, #tpu.memory_space<vmem>>, vector<1x16x32xf32>
    %114 = vector.shape_cast %113 : vector<1x16x32xf32> to vector<16x32xf32>
    %115 = vector.broadcast %112 : vector<16x1xf32> to vector<16x32xf32>
    %116 = arith.mulf %115, %114 : vector<16x32xf32>
    %117 = arith.addf %111, %116 : vector<16x32xf32>
    %118 = vector.extract_strided_slice %53 {offsets = [0, 2], sizes = [16, 1], strides = [1, 1]} : vector<16x4xf32> to vector<16x1xf32>
    %c2_77 = arith.constant 2 : index
    %c0_78 = arith.constant 0 : index
    %c0_79 = arith.constant 0 : index
    %119 = vector.load %arg1[%c2_77, %c0_78, %c0_79] : memref<4x16x32xf32, #tpu.memory_space<vmem>>, vector<1x16x32xf32>
    %120 = vector.shape_cast %119 : vector<1x16x32xf32> to vector<16x32xf32>
    %121 = vector.broadcast %118 : vector<16x1xf32> to vector<16x32xf32>
    %122 = arith.mulf %121, %120 : vector<16x32xf32>
    %123 = arith.addf %117, %122 : vector<16x32xf32>
    %124 = vector.extract_strided_slice %53 {offsets = [0, 3], sizes = [16, 1], strides = [1, 1]} : vector<16x4xf32> to vector<16x1xf32>
    %c3_80 = arith.constant 3 : index
    %c0_81 = arith.constant 0 : index
    %c0_82 = arith.constant 0 : index
    %125 = vector.load %arg1[%c3_80, %c0_81, %c0_82] : memref<4x16x32xf32, #tpu.memory_space<vmem>>, vector<1x16x32xf32>
    %126 = vector.shape_cast %125 : vector<1x16x32xf32> to vector<16x32xf32>
    %127 = vector.broadcast %124 : vector<16x1xf32> to vector<16x32xf32>
    %128 = arith.mulf %127, %126 : vector<16x32xf32>
    %129 = arith.addf %123, %128 : vector<16x32xf32>
    %c0_83 = arith.constant 0 : index
    %c64 = arith.constant 64 : index
    %130 = vector.load %arg4[%c0_83, %c64] : memref<16x128xf32, #tpu.memory_space<vmem>>, vector<16x32xf32>
    tpu.vector_store %arg4[%c0_83, %c64], %129 {strides = array<i32>} : memref<16x128xf32, #tpu.memory_space<vmem>>, vector<16x32xf32>,
    %131 = vector.extract_strided_slice %54 {offsets = [0, 0], sizes = [16, 1], strides = [1, 1]} : vector<16x4xf32> to vector<16x1xf32>
    %c0_84 = arith.constant 0 : index
    %c0_85 = arith.constant 0 : index
    %c0_86 = arith.constant 0 : index
    %132 = vector.load %arg1[%c0_84, %c0_85, %c0_86] : memref<4x16x32xf32, #tpu.memory_space<vmem>>, vector<1x16x32xf32>
    %133 = vector.shape_cast %132 : vector<1x16x32xf32> to vector<16x32xf32>
    %134 = vector.broadcast %131 : vector<16x1xf32> to vector<16x32xf32>
    %135 = arith.mulf %134, %133 : vector<16x32xf32>
    %136 = vector.extract_strided_slice %54 {offsets = [0, 1], sizes = [16, 1], strides = [1, 1]} : vector<16x4xf32> to vector<16x1xf32>
    %c1_87 = arith.constant 1 : index
    %c0_88 = arith.constant 0 : index
    %c0_89 = arith.constant 0 : index
    %137 = vector.load %arg1[%c1_87, %c0_88, %c0_89] : memref<4x16x32xf32, #tpu.memory_space<vmem>>, vector<1x16x32xf32>
    %138 = vector.shape_cast %137 : vector<1x16x32xf32> to vector<16x32xf32>
    %139 = vector.broadcast %136 : vector<16x1xf32> to vector<16x32xf32>
    %140 = arith.mulf %139, %138 : vector<16x32xf32>
    %141 = arith.addf %135, %140 : vector<16x32xf32>
    %142 = vector.extract_strided_slice %54 {offsets = [0, 2], sizes = [16, 1], strides = [1, 1]} : vector<16x4xf32> to vector<16x1xf32>
    %c2_90 = arith.constant 2 : index
    %c0_91 = arith.constant 0 : index
    %c0_92 = arith.constant 0 : index
    %143 = vector.load %arg1[%c2_90, %c0_91, %c0_92] : memref<4x16x32xf32, #tpu.memory_space<vmem>>, vector<1x16x32xf32>
    %144 = vector.shape_cast %143 : vector<1x16x32xf32> to vector<16x32xf32>
    %145 = vector.broadcast %142 : vector<16x1xf32> to vector<16x32xf32>
    %146 = arith.mulf %145, %144 : vector<16x32xf32>
    %147 = arith.addf %141, %146 : vector<16x32xf32>
    %148 = vector.extract_strided_slice %54 {offsets = [0, 3], sizes = [16, 1], strides = [1, 1]} : vector<16x4xf32> to vector<16x1xf32>
    %c3_93 = arith.constant 3 : index
    %c0_94 = arith.constant 0 : index
    %c0_95 = arith.constant 0 : index
    %149 = vector.load %arg1[%c3_93, %c0_94, %c0_95] : memref<4x16x32xf32, #tpu.memory_space<vmem>>, vector<1x16x32xf32>
    %150 = vector.shape_cast %149 : vector<1x16x32xf32> to vector<16x32xf32>
    %151 = vector.broadcast %148 : vector<16x1xf32> to vector<16x32xf32>
    %152 = arith.mulf %151, %150 : vector<16x32xf32>
    %153 = arith.addf %147, %152 : vector<16x32xf32>
    %c0_96 = arith.constant 0 : index
    %c96 = arith.constant 96 : index
    %154 = vector.load %arg4[%c0_96, %c96] : memref<16x128xf32, #tpu.memory_space<vmem>>, vector<16x32xf32>
    tpu.vector_store %arg4[%c0_96, %c96], %153 {strides = array<i32>} : memref<16x128xf32, #tpu.memory_space<vmem>>, vector<16x32xf32>,
    return
  }
  func.func @transform_0(%arg0: i32) -> (i32, i32, i32) {
    %c0_i32 = arith.constant 0 : i32
    %c0_i32_0 = arith.constant 0 : i32
    %c0_i32_1 = arith.constant 0 : i32
    return %c0_i32, %arg0, %c0_i32_0 : i32, i32, i32
  }
  func.func @transform_1(%arg0: i32) -> (i32, i32, i32) {
    %c0_i32 = arith.constant 0 : i32
    %c0_i32_0 = arith.constant 0 : i32
    %c0_i32_1 = arith.constant 0 : i32
    %c0_i32_2 = arith.constant 0 : i32
    return %c0_i32, %c0_i32_0, %c0_i32_1 : i32, i32, i32
  }
  func.func @transform_2(%arg0: i32) -> (i32, i32, i32) {
    %c0_i32 = arith.constant 0 : i32
    %c0_i32_0 = arith.constant 0 : i32
    %c0_i32_1 = arith.constant 0 : i32
    %c0_i32_2 = arith.constant 0 : i32
    return %c0_i32, %c0_i32_0, %c0_i32_1 : i32, i32, i32
  }
  func.func @transform_3(%arg0: i32) -> (i32, i32) {
    %c0_i32 = arith.constant 0 : i32
    %c0_i32_0 = arith.constant 0 : i32
    return %arg0, %c0_i32 : i32, i32
  }
  func.func @transform_4(%arg0: i32) -> (i32, i32) {
    %c0_i32 = arith.constant 0 : i32
    %c0_i32_0 = arith.constant 0 : i32
    return %arg0, %c0_i32 : i32, i32
  }
}

</mosaic_0001>

<bundles_post_ra>
// kernel: tpu_custom_call.1
= control target key start
LH: loop header
LB: loop body
LE: loop exit
PB: predicated region body
PF: predicated region fallthrough
CT: control target
= control target key end

     0   :  { %10 = vsyncpa [#allocation3], 0  ;;  %vm24_vm0 = vcmask 261120   ;;  %s1654_s0 = inlined_call_operand.vmem [shape: f32[4,16,32], index: 0, kind: input, shape index: {}]   ;;  %s1655_s1 = inlined_call_operand.vmem [shape: f32[4,32,16], index: 1, kind: input, shape index: {}]   ;;  %s1656_s2 = inlined_call_operand.vmem [shape: f32[4,16,4], index: 2, kind: input, shape index: {}]   ;;  %s1657_s3 = inlined_call_operand.hbm [shape: f32[16,128], index: 3, kind: output, shape index: {0}]   ;;  %s1658_s4 = inlined_call_operand.hbm [shape: f32[16,16], index: 4, kind: output, shape index: {1}]  }
   0x1   :  { %v23_v0 = vld [vmem:[%s1655_s1 + $0x18] sm:$0xff]  ;;  %v22_v1 = vld [vmem:[%s1655_s1 + $0x10] sm:$0xff]  ;;  %v1428_v2 = vld [vmem:[%s1654_s0] sm:$0xff] }
   0x2   :  { %1188 = vmatprep.subr.mxu0 %v23_v0  ;;  %v21_v3 = vld [vmem:[%s1655_s1 + $0x8] sm:$0xff]  ;;  %1196 = vmatprep.mubr.msk.f32.mxu0 %vm24_vm0, %v1428_v2 }
   0x3   :  { %1189 = vmatpush3.msra.mxu0 %v23_v0 }
   0x4   :  { %11 = vsyncpa [#allocation5], 0  ;;  %1190 = vmatprep.subr.mxu0 %v22_v1  ;;  %v20_v4 = vld [vmem:[%s1655_s1] sm:$0xff]  ;;  %v1441_v5 = vld [vmem:[%s1654_s0 + $0x8] sm:$0xff]  ;;  %vm110_vm1 = vcmask 130048   ;;  %v1381_v54 = vmov 0  }
   0x5   :  { %1191 = vmatpush3.msra.mxu0 %v22_v1  ;;  %v109_v6 = vld [vmem:[%s1656_s2 + $0x8] sm:$0xff]  ;;  %v108_v7 = vld [vmem:[%s1656_s2] sm:$0xff]  ;;  %v1093_v8 = vld [vmem:[%s1655_s1 + $0x38] sm:$0xff]  ;;  %1274 = vset.pattern.permute.xlu0 %v1381_v54  ;;  %vm763_vm2 = vcmask 31744   ;;  %vm774_vm3 = vcmask 64544   ;;  %vm785_vm4 = vcmask 97344  }
   0x6   :  { %1192 = vmatprep.subr.mxu0 %v21_v3  ;;  %1199 = vmatprep.subr.mxu1 %v109_v6  ;;  %v1457_v12 = vld [vmem:[%s1654_s0 + $0x10] sm:$0xff]  ;;  %v1091_v15 = vld [vmem:[%s1655_s1 + $0x28] sm:$0xff]  ;;  %v1090_v16 = vld [vmem:[%s1655_s1 + $0x20] sm:$0xff]  ;;  %vm796_vm5 = vcmask 130144   ;;  %s1388_s27 = smov 32   ;;  %s1389_s28 = smov 64  }
   0x7   :  { %1193 = vmatpush3.msra.mxu0 %v21_v3  ;;  %1200 = vmatpush3.msra.mxu1 %v109_v6  ;;  %v1092_v14 = vld [vmem:[%s1655_s1 + $0x30] sm:$0xff]  ;;  %v1475_v17 = vld [vmem:[%s1654_s0 + $0x18] sm:$0xff]  ;;  %v1495_v26 = vld [vmem:[%s1654_s0 + $0x20] sm:$0xff]  ;;  %s1390_s29 = smov [#allocation4]  }
   0x8   :  { %1194 = vmatprep.subr.mxu0 %v20_v4  ;;  %1201 = vmatprep.subr.mxu1 %v108_v7  ;;  %v1097_v18 = vld [vmem:[%s1656_s2 + $0x18] sm:$0xff]  ;;  %v1096_v19 = vld [vmem:[%s1656_s2 + $0x10] sm:$0xff]  ;;  %v1103_v29 = vld [vmem:[%s1655_s1 + $0x48] sm:$0xff]  ;;  %s1069_s30 = sshll.u32 %s1390_s29, 4  ;;  %s1070_s30 = int_to_ptr.vmem [resolvable:$true] %s1069_s30 }
   0x9   :  { %1195 = vmatpush3.msra.mxu0 %v20_v4  ;;  %1202 = vmatpush3.msra.mxu1 %v108_v7  ;;  %v1105_v20 = vld [vmem:[%s1655_s1 + $0x58] sm:$0xff]  ;;  %v1104_v28 = vld [vmem:[%s1655_s1 + $0x50] sm:$0xff]  ;;  %v1102_v30 = vld [vmem:[%s1655_s1 + $0x40] sm:$0xff]  ;;  %s1337_s5 = scalar_lea.vmem %s1070_s30, 256  ;;  %p1342_p1 = scmp.lt.s32.totalorder %s1070_s30, %s1070_s30 }
   0xa   :  { %1197 = vmatmul.mubr.msk.f32.vlgmr.msra.gmra.mxu0 %vm24_vm0, %v1441_v5  ;;  %1206 = vmatprep.subr.mxu1 %v1093_v8  ;;  %v1513_v31 = vld [vmem:[%s1654_s0 + $0x28] sm:$0xff]  ;;  %v1108_v33 = vld [vmem:[%s1656_s2 + $0x20] sm:$0xff]  ;;  %v1117_v34 = vld [vmem:[%s1655_s1 + $0x78] sm:$0xff]  ;;  %p1338_p0 = scmp.ne.s32.totalorder %s1070_s30, %s1337_s5  ;;  %p1343_p2 = scmp.lt.s32.totalorder %s1337_s5, %s1337_s5 }
   0xb   :  { %1217 = vmatprep.subr.mxu0 %v1097_v18  ;;  %v1109_v32 = vld [vmem:[%s1656_s2 + $0x28] sm:$0xff]  ;;  %v1531_v40 = vld [vmem:[%s1654_s0 + $0x30] sm:$0xff]  ;;  %v1114_v44 = vld [vmem:[%s1655_s1 + $0x60] sm:$0xff]  ;;  %1273 = vset.pattern.permute.xlu1 %v1381_v54 }
   0xc   :  { %1218 = vmatpush3.msra.mxu0 %v1097_v18  ;;  %v1116_v42 = vld [vmem:[%s1655_s1 + $0x70] sm:$0xff]  ;;  %v1115_v43 = vld [vmem:[%s1655_s1 + $0x68] sm:$0xff]  ;;  %v1549_v45 = vld [vmem:[%s1654_s0 + $0x38] sm:$0xff]  ;;  %s1382_s0 = smov 8   ;;  %s1383_s1 = smov 4  }
   0xd   :  { %1219 = vmatprep.subr.mxu0 %v1096_v19  ;;  %v1121_v46 = vld [vmem:[%s1656_s2 + $0x38] sm:$0xff]  ;;  %v1120_v47 = vld [vmem:[%s1656_s2 + $0x30] sm:$0xff]  ;;  %s1384_s2 = smov 12   ;;  %p1344_p3 = por %p1343_p2, %p1342_p1 }
   0xe   :  { %1220 = vmatpush3.msra.mxu0 %v1096_v19 }
   0xf   :  { %1224 = vmatprep.subr.mxu0 %v1105_v20  ;;  %p1345_p4 = pnand %p1344_p3, %p1338_p0 }
  0xca   :  { %v1198_v9 = vpop.f32.mrf.mxu0 }
  0xcc   :  { %v97_v10 = vpop.f32.mrf.mxu0 }
  0xcd   :  { %1301 = vtanh.f32 %v97_v10 }
  0xce   :  { %1303 = vtanh.f32 %v1198_v9 }
  0xda   :  { %v1302_v11 = vpop.eup %1301 }
  0xdb   :  { %v1304_v13 = vpop.eup %1303  ;;  %1203 = vmatprep.mubr.msk.f32.mxu1 %vm110_vm1, %v1302_v11 }
  0xdc   :  { %1204 = vmatmul.mubr.msk.f32.vlgmr.msra.gmra.mxu1 %vm110_vm1, %v1304_v13 }
  0xdd   :  { %1207 = vmatpush3.msra.mxu1 %v1093_v8  ;;  %1214 = vmatprep.mubr.msk.f32.mxu1 %vm24_vm0, %v1457_v12 }
  0xde   :  { %1208 = vmatprep.subr.mxu1 %v1092_v14 }
  0xdf   :  { %1209 = vmatpush3.msra.mxu1 %v1092_v14 }
  0xe0   :  { %1210 = vmatprep.subr.mxu1 %v1091_v15 }
  0xe1   :  { %1211 = vmatpush3.msra.mxu1 %v1091_v15 }
  0xe2   :  { %1212 = vmatprep.subr.mxu1 %v1090_v16 }
  0xe3   :  { %1213 = vmatpush3.msra.mxu1 %v1090_v16 }
  0xe4   :  { %1215 = vmatmul.mubr.msk.f32.vlgmr.msra.gmra.mxu1 %vm24_vm0, %v1475_v17  ;;  %1235 = vmatprep.subr.mxu1 %v1109_v32 }
  0xe5   :  { %1236 = vmatpush3.msra.mxu1 %v1109_v32 }
  0xe6   :  { %1237 = vmatprep.subr.mxu1 %v1108_v33 }
  0xe7   :  { %1238 = vmatpush3.msra.mxu1 %v1108_v33 }
  0xe8   :  { %1242 = vmatprep.subr.mxu1 %v1117_v34 }
 0x19c   :  { %v1488_v21 = vpop.f32.mrf.mxu1 }
 0x19e   :  { %v1490_v22 = vpop.f32.mrf.mxu1 }
 0x1a4   :  { %v1216_v23 = vpop.f32.mrf.mxu1 }
 0x1a6   :  { %v272_v24 = vpop.f32.mrf.mxu1 }
 0x1a7   :  { %1305 = vtanh.f32 %v272_v24 }
 0x1a8   :  { %1307 = vtanh.f32 %v1216_v23 }
 0x1b4   :  { %v1306_v25 = vpop.eup %1305 }
 0x1b5   :  { %v1308_v27 = vpop.eup %1307  ;;  %1221 = vmatprep.mubr.msk.f32.mxu0 %vm110_vm1, %v1306_v25 }
 0x1b6   :  { %1222 = vmatmul.mubr.msk.f32.vlgmr.msra.gmra.mxu0 %vm110_vm1, %v1308_v27 }
 0x1b7   :  { %1225 = vmatpush3.msra.mxu0 %v1105_v20  ;;  %1232 = vmatprep.mubr.msk.f32.mxu0 %vm24_vm0, %v1495_v26 }
 0x1b8   :  { %1226 = vmatprep.subr.mxu0 %v1104_v28 }
 0x1b9   :  { %1227 = vmatpush3.msra.mxu0 %v1104_v28 }
 0x1ba   :  { %1228 = vmatprep.subr.mxu0 %v1103_v29 }
 0x1bb   :  { %1229 = vmatpush3.msra.mxu0 %v1103_v29 }
 0x1bc   :  { %1230 = vmatprep.subr.mxu0 %v1102_v30 }
 0x1bd   :  { %1231 = vmatpush3.msra.mxu0 %v1102_v30 }
 0x1be   :  { %1233 = vmatmul.mubr.msk.f32.vlgmr.msra.gmra.mxu0 %vm24_vm0, %v1513_v31  ;;  %1253 = vmatprep.subr.mxu0 %v1121_v46 }
 0x1bf   :  { %1254 = vmatpush3.msra.mxu0 %v1121_v46  ;;  %v1387_v46 = vmov 2  }
 0x1c0   :  { %1255 = vmatprep.subr.mxu0 %v1120_v47 }
 0x1c1   :  { %1256 = vmatpush3.msra.mxu0 %v1120_v47 }
 0x276   :  { %v1223_v35 = vpop.f32.mrf.mxu0 }
 0x277   :  { %v718_v55 = vmax.f32 %v1488_v21, %v1223_v35 }
 0x278   :  { %v1526_v36 = vpop.f32.mrf.mxu0 }
 0x279   :  { %v717_v57 = vmax.f32 %v1490_v22, %v1526_v36 }
 0x27e   :  { %v1234_v37 = vpop.f32.mrf.mxu0 }
 0x280   :  { %v447_v38 = vpop.f32.mrf.mxu0 }
 0x281   :  { %1309 = vtanh.f32 %v447_v38 }
 0x282   :  { %1311 = vtanh.f32 %v1234_v37 }
 0x28e   :  { %v1310_v39 = vpop.eup %1309 }
 0x28f   :  { %v1312_v41 = vpop.eup %1311  ;;  %1239 = vmatprep.mubr.msk.f32.mxu1 %vm110_vm1, %v1310_v39 }
 0x290   :  { %1240 = vmatmul.mubr.msk.f32.vlgmr.msra.gmra.mxu1 %vm110_vm1, %v1312_v41 }
 0x291   :  { %1243 = vmatpush3.msra.mxu1 %v1117_v34  ;;  %1250 = vmatprep.mubr.msk.f32.mxu1 %vm24_vm0, %v1531_v40 }
 0x292   :  { %1244 = vmatprep.subr.mxu1 %v1116_v42 }
 0x293   :  { %1245 = vmatpush3.msra.mxu1 %v1116_v42 }
 0x294   :  { %1246 = vmatprep.subr.mxu1 %v1115_v43 }
 0x295   :  { %1247 = vmatpush3.msra.mxu1 %v1115_v43  ;;  %v1385_v43 = vmov 1  }
 0x296   :  { %1248 = vmatprep.subr.mxu1 %v1114_v44 }
 0x297   :  { %1249 = vmatpush3.msra.mxu1 %v1114_v44  ;;  %v1386_v44 = vmov 3  }
 0x298   :  { %1251 = vmatmul.mubr.msk.f32.vlgmr.msra.gmra.mxu1 %vm24_vm0, %v1549_v45 }
 0x350   :  { %v1241_v48 = vpop.f32.mrf.mxu1 }
 0x351   :  { %v720_v56 = vmax.f32 %v718_v55, %v1241_v48 }
 0x352   :  { %v533_v49 = vpop.f32.mrf.mxu1 }
 0x353   :  { %v719_v60 = vmax.f32 %v717_v57, %v533_v49 }
 0x358   :  { %v1252_v50 = vpop.f32.mrf.mxu1 }
 0x35a   :  { %v622_v51 = vpop.f32.mrf.mxu1 }
 0x35b   :  { %1313 = vtanh.f32 %v622_v51 }
 0x35c   :  { %1315 = vtanh.f32 %v1252_v50 }
 0x368   :  { %v1314_v52 = vpop.eup %1313 }
 0x369   :  { %v1316_v53 = vpop.eup %1315  ;;  %1257 = vmatprep.mubr.msk.f32.mxu0 %vm110_vm1, %v1314_v52 }
 0x36a   :  { %1258 = vmatmul.mubr.msk.f32.vlgmr.msra.gmra.mxu0 %vm110_vm1, %v1316_v53 }
 0x42a   :  { %v1259_v58 = vpop.f32.mrf.mxu0 }
 0x42b   :  { %v722_v59 = vmax.f32 %v720_v56, %v1259_v58 }
 0x42c   :  { %v708_v61 = vpop.f32.mrf.mxu0 }
 0x42d   :  { %v724_v62 = vsub.f32 %v1488_v21, %v722_v59  ;;  %v730_v63 = vsub.f32 %v1223_v35, %v722_v59  ;;  %v736_v0 = vsub.f32 %v1241_v48, %v722_v59  ;;  %v742_v1 = vsub.f32 %v1259_v58, %v722_v59 }
 0x42e   :  { %v721_v3 = vmax.f32 %v719_v60, %v708_v61 }
 0x42f   :  { %v727_v4 = vmul.f32 1.442695, %v724_v62  ;;  %v733_v6 = vmul.f32 1.442695, %v730_v63  ;;  %v739_v7 = vmul.f32 1.442695, %v736_v0 }
 0x430   :  { %v745_v8 = vmul.f32 1.442695, %v742_v1  ;;  %v723_v9 = vsub.f32 %v1490_v22, %v721_v3  ;;  %v729_v10 = vsub.f32 %v1526_v36, %v721_v3  ;;  %v735_v11 = vsub.f32 %v533_v49, %v721_v3 }
 0x431   :  { %1317 = vpow2.f32 %v727_v4  ;;  %v741_v15 = vsub.f32 %v708_v61, %v721_v3 }
 0x432   :  { %1319 = vpow2.f32 %v733_v6  ;;  %v725_v13 = vmul.f32 1.442695, %v723_v9  ;;  %v731_v14 = vmul.f32 1.442695, %v729_v10  ;;  %v737_v16 = vmul.f32 1.442695, %v735_v11 }
 0x433   :  { %1321 = vpow2.f32 %v739_v7  ;;  %v743_v18 = vmul.f32 1.442695, %v741_v15 }
 0x434   :  { %1323 = vpow2.f32 %v745_v8 }
 0x435   :  { %1325 = vpow2.f32 %v725_v13 }
 0x436   :  { %1327 = vpow2.f32 %v731_v14 }
 0x437   :  { %1329 = vpow2.f32 %v737_v16 }
 0x438   :  { %1331 = vpow2.f32 %v743_v18 }
 0x43e   :  { %v1318_v19 = vpop.eup %1317 }
 0x43f   :  { %v1320_v20 = vpop.eup %1319 }
 0x440   :  { %v1322_v21 = vpop.eup %1321  ;;  %v748_v22 = vadd.f32 %v1320_v20, %v1318_v19 }
 0x441   :  { %v1324_v23 = vpop.eup %1323 }
 0x442   :  { %v1326_v24 = vpop.eup %1325  ;;  %v750_v25 = vadd.f32 %v1322_v21, %v748_v22 }
 0x443   :  { %v1328_v27 = vpop.eup %1327 }
 0x444   :  { %v752_v28 = vadd.f32 %v1324_v23, %v750_v25  ;;  %v747_v29 = vadd.f32 %v1328_v27, %v1326_v24  ;;  %v1330_v30 = vpop.eup %1329 }
 0x445   :  { %v1332_v33 = vpop.eup %1331 }
 0x446   :  { %1333 = vrcp.f32 %v752_v28  ;;  %v749_v32 = vadd.f32 %v1330_v30, %v747_v29 }
 0x448   :  { %v751_v34 = vadd.f32 %v1332_v33, %v749_v32 }
 0x44a   :  { %1335 = vrcp.f32 %v751_v34 }
 0x453   :  { %v1334_v35 = vpop.eup %1333 }
 0x454   :  { %v760_v36 = vmul.f32 %v1334_v35, %v1322_v21  ;;  %v758_v37 = vmul.f32 %v1334_v35, %v1320_v20  ;;  %v1569_v38 = vmul.f32 %v1334_v35, %v1318_v19  ;;  %v762_v41 = vmul.f32 %v1334_v35, %v1324_v23 }
 0x456   :  { %781 = vrot.lane.b32.xlu1 %v760_v36, %s1382_s0  ;;  %770 = vrot.lane.b32.xlu0 %v758_v37, %s1383_s1  ;;  %765 = vst.msk [vmem:[#allocation4 + $0x8] sm:$0xff] %vm763_vm2, %v1569_v38 }
 0x457   :  { %v1336_v39 = vpop.eup %1335 }
 0x458   :  { %v1573_v42 = vmul.f32 %v1336_v39, %v1326_v24  ;;  %v757_v47 = vmul.f32 %v1336_v39, %v1328_v27  ;;  %v761_v48 = vmul.f32 %v1336_v39, %v1332_v33  ;;  %v759_v49 = vmul.f32 %v1336_v39, %v1330_v30 }
 0x45a   :  { %792 = vrot.lane.b32.xlu1 %v762_v41, %s1384_s2  ;;  %864 = vperm.xlu0 %1274, %v758_v37   ;;  %764 = vst.msk [vmem:[#allocation4] sm:$0xff] %vm763_vm2, %v1573_v42 }
 0x45e   :  { %1275 = vset.pattern.permute.xlu0 %v1385_v43  ;;  %808 = vperm.xlu1 %1273, %v1569_v38  }
 0x45f   :  { %876 = vperm.xlu0 %1275, %v758_v37  }
 0x462   :  { %929 = vperm.xlu1 %1273, %v760_v36  }
 0x463   :  { %1278 = vset.pattern.permute.xlu0 %v1381_v54 }
 0x464   :  { %994 = vperm.xlu0 %1278, %v762_v41  }
 0x466   :  { %1276 = vset.pattern.permute.xlu1 %v1385_v43 }
 0x467   :  { %941 = vperm.xlu1 %1276, %v760_v36  }
 0x468   :  { %1281 = vset.pattern.permute.xlu0 %v1386_v44 }
 0x469   :  { %904 = vperm.xlu0 %1281, %v758_v37  }
 0x46b   :  { %1277 = vset.pattern.permute.xlu1 %v1387_v46 }
 0x46c   :  { %890 = vperm.xlu1 %1277, %v758_v37  }
 0x46d   :  { %768 = vrot.lane.b32.xlu0 %v757_v47, %s1383_s1 }
 0x46e   :  { %1283 = vset.pattern.permute.xlu0 %v1381_v54 }
 0x470   :  { %1279 = vset.pattern.permute.xlu1 %v1385_v43 }
 0x471   :  { %1006 = vperm.xlu1 %1279, %v762_v41   ;;  %790 = vrot.lane.b32.xlu0 %v761_v48, %s1384_s2 }
 0x475   :  { %1280 = vset.pattern.permute.xlu1 %v1387_v46  ;;  %803 = vperm.xlu0 %1283, %v1573_v42  }
 0x476   :  { %955 = vperm.xlu1 %1280, %v760_v36  }
 0x479   :  { %1287 = vset.pattern.permute.xlu0 %v1385_v43 }
 0x47a   :  { %1020 = vperm.xlu1 %1280, %v762_v41   ;;  %937 = vperm.xlu0 %1287, %v759_v49  }
 0x47e   :  { %1282 = vset.pattern.permute.xlu1 %v1386_v44  ;;  %1288 = vset.pattern.permute.xlu0 %v1387_v46 }
 0x47f   :  { %969 = vperm.xlu1 %1282, %v760_v36   ;;  %886 = vperm.xlu0 %1288, %v757_v47  }
 0x483   :  { %779 = vrot.lane.b32.xlu1 %v759_v49, %s1382_s0  ;;  %951 = vperm.xlu0 %1288, %v759_v49  }
 0x484   :  { %1284 = vset.pattern.permute.xlu1 %v1381_v54 }
 0x487   :  { %860 = vperm.xlu1 %1284, %v757_v47   ;;  %1292 = vset.pattern.permute.xlu0 %v1386_v44 }
 0x488   :  { %965 = vperm.xlu0 %1292, %v759_v49  }
 0x48b   :  { %1285 = vset.pattern.permute.xlu1 %v1385_v43 }
 0x48c   :  { %872 = vperm.xlu1 %1285, %v757_v47   ;;  %1030 = vperm.xlu0 %1292, %v761_v48  }
 0x490   :  { %1286 = vset.pattern.permute.xlu1 %v1381_v54  ;;  %1295 = vset.pattern.permute.xlu0 %v1387_v46 }
 0x491   :  { %925 = vperm.xlu1 %1286, %v759_v49   ;;  %834 = vperm.xlu0 %1295, %v1569_v38  }
 0x495   :  { %990 = vperm.xlu1 %1286, %v761_v48   ;;  %1297 = vset.pattern.permute.xlu0 %v1385_v43 }
 0x496   :  { %816 = vperm.xlu0 %1297, %v1573_v42  }
 0x499   :  { %1289 = vset.pattern.permute.xlu1 %v1385_v43 }
 0x49a   :  { %1002 = vperm.xlu1 %1289, %v761_v48   ;;  %1300 = vset.pattern.permute.xlu0 %v1386_v44 }
 0x49e   :  { %1290 = vset.pattern.permute.xlu1 %v1386_v44 }
 0x49f   :  { %900 = vperm.xlu1 %1290, %v757_v47  }
 0x4a3   :  { %1291 = vset.pattern.permute.xlu1 %v1387_v46 }
 0x4a4   :  { %1016 = vperm.xlu1 %1291, %v761_v48  }
 0x4a8   :  { %1293 = vset.pattern.permute.xlu1 %v1386_v44 }
 0x4a9   :  { %1034 = vperm.xlu1 %1293, %v762_v41  }
 0x4ad   :  { %1294 = vset.pattern.permute.xlu1 %v1385_v43 }
 0x4ae   :  { %820 = vperm.xlu1 %1294, %v1569_v38  }
 0x4b2   :  { %1296 = vset.pattern.permute.xlu1 %v1386_v44 }
 0x4b3   :  { %848 = vperm.xlu1 %1296, %v1569_v38  }
 0x4b7   :  { %1298 = vset.pattern.permute.xlu1 %v1387_v46 }
 0x4b8   :  { %830 = vperm.xlu1 %1298, %v1573_v42  }
 0x4bc   :  { %1299 = vset.pattern.permute.xlu1 %v1386_v44 }
 0x4bd   :  { %844 = vperm.xlu1 %1299, %v1573_v42  }
 0x4c8   :  { %v782_v50 = vpop.permute.xlu1 %781  ;;  %v771_v51 = vpop.permute.xlu0 %770 }
 0x4c9   :  { %776 = vst.msk [vmem:[#allocation4 + $0x8] sm:$0xff] %vm774_vm3, %v771_v51 }
 0x4ca   :  { %787 = vst.msk [vmem:[#allocation4 + $0x8] sm:$0xff] %vm785_vm4, %v782_v50 }
 0x4cc   :  { %v793_v52 = vpop.permute.xlu1 %792 }
 0x4cd   :  { %798 = vst.msk [vmem:[#allocation4 + $0x8] sm:$0xff] %vm796_vm5, %v793_v52 }
 0x4d5   :  { %v865_v53 = vpop.permute.xlu0 %864 }
 0x4d6   :  { %v868_v61 = vmul.f32 %v865_v53, %v1441_v5 }
 0x4d9   :  { %v1592_v54 = vpop.permute.xlu1 %808 }
 0x4da   :  { %v877_v55 = vpop.permute.xlu0 %876 }
 0x4db   :  { %v880_v59 = vmul.f32 %v1475_v17, %v877_v55 }
 0x4dd   :  { %v930_v56 = vpop.permute.xlu1 %929  ;;  %v882_v63 = vadd.f32 %v880_v59, %v868_v61 }
 0x4de   :  { %v933_v11 = vmul.f32 %v930_v56, %v1441_v5 }
 0x4df   :  { %v1594_v57 = vpop.permute.xlu0 %994 }
 0x4e2   :  { %v942_v58 = vpop.permute.xlu1 %941 }
 0x4e3   :  { %v945_v9 = vmul.f32 %v1475_v17, %v942_v58 }
 0x4e4   :  { %v905_v60 = vpop.permute.xlu0 %904 }
 0x4e5   :  { %v908_v3 = vmul.f32 %v1549_v45, %v905_v60  ;;  %v947_v14 = vadd.f32 %v945_v9, %v933_v11 }
 0x4e7   :  { %v891_v62 = vpop.permute.xlu1 %890 }
 0x4e8   :  { %v894_v0 = vmul.f32 %v1513_v31, %v891_v62  ;;  %v769_v1 = vpop.permute.xlu0 %768 }
 0x4e9   :  { %775 = vst.msk [vmem:[#allocation4] sm:$0xff] %vm774_vm3, %v769_v1 }
 0x4ea   :  { %v896_v4 = vadd.f32 %v894_v0, %v882_v63 }
 0x4ec   :  { %v1007_v6 = vpop.permute.xlu1 %1006  ;;  %v910_v7 = vadd.f32 %v908_v3, %v896_v4  ;;  %v791_v16 = vpop.permute.xlu0 %790 }
 0x4ed   :  { %v1010_v51 = vmul.f32 %v1475_v17, %v1007_v6 }
 0x4ee   :  { %915 = vrot.lane.b32.xlu1 %v910_v7, %s1388_s27 }
 0x4f0   :  { %v1609_v22 = vpop.permute.xlu0 %803 }
 0x4f1   :  { %v956_v8 = vpop.permute.xlu1 %955 }
 0x4f2   :  { %v959_v13 = vmul.f32 %v1513_v31, %v956_v8 }
 0x4f4   :  { %v961_v18 = vadd.f32 %v959_v13, %v947_v14 }
 0x4f5   :  { %v1021_v10 = vpop.permute.xlu1 %1020  ;;  %v938_v24 = vpop.permute.xlu0 %937 }
 0x4f6   :  { %v944_v36 = vmul.f32 %v1457_v12, %v938_v24 }
 0x4fa   :  { %v970_v15 = vpop.permute.xlu1 %969  ;;  %v887_v28 = vpop.permute.xlu0 %886 }
 0x4fb   :  { %v973_v19 = vmul.f32 %v1549_v45, %v970_v15  ;;  %v893_v38 = vmul.f32 %v1495_v26, %v887_v28 }
 0x4fd   :  { %v975_v20 = vadd.f32 %v973_v19, %v961_v18 }
 0x4fe   :  { %v780_v21 = vpop.permute.xlu1 %779  ;;  %v952_v30 = vpop.permute.xlu0 %951 }
 0x4ff   :  { %786 = vst.msk [vmem:[#allocation4] sm:$0xff] %vm785_vm4, %v780_v21  ;;  %980 = vrot.lane.b32.xlu1 %v975_v20, %s1389_s28  ;;  %v958_v43 = vmul.f32 %v1495_v26, %v952_v30 }
 0x500   :  { %797 = vst.msk [vmem:[#allocation4] sm:$0xff] %vm796_vm5, %v791_v16 }
 0x502   :  { %v861_v23 = vpop.permute.xlu1 %860 }
 0x503   :  { %v867_v33 = vmul.f32 %v861_v23, %v1428_v2  ;;  %v966_v39 = vpop.permute.xlu0 %965 }
 0x504   :  { %v972_v52 = vmul.f32 %v1531_v40, %v966_v39 }
 0x507   :  { %v873_v25 = vpop.permute.xlu1 %872  ;;  %v1031_v53 = vpop.permute.xlu0 %1030 }
 0x508   :  { %v879_v32 = vmul.f32 %v1457_v12, %v873_v25 }
 0x50a   :  { %v881_v37 = vadd.f32 %v879_v32, %v867_v33 }
 0x50c   :  { %v926_v27 = vpop.permute.xlu1 %925  ;;  %v895_v44 = vadd.f32 %v893_v38, %v881_v37 }
 0x50d   :  { %v932_v34 = vmul.f32 %v926_v27, %v1428_v2 }
 0x50f   :  { %v946_v41 = vadd.f32 %v944_v36, %v932_v34 }
 0x510   :  { %v991_v29 = vpop.permute.xlu1 %990 }
 0x511   :  { %v960_v48 = vadd.f32 %v958_v43, %v946_v41  ;;  %v997_v50 = vmul.f32 %v991_v29, %v1428_v2 }
 0x515   :  { %v1003_v35 = vpop.permute.xlu1 %1002 }
 0x516   :  { %v1009_v47 = vmul.f32 %v1457_v12, %v1003_v35 }
 0x518   :  { %v1011_v56 = vadd.f32 %v1009_v47, %v997_v50 }
 0x51a   :  { %v901_v42 = vpop.permute.xlu1 %900 }
 0x51b   :  { %v907_v46 = vmul.f32 %v1531_v40, %v901_v42 }
 0x51d   :  { %v909_v49 = vadd.f32 %v907_v46, %v895_v44 }
 0x51f   :  { %v1017_v55 = vpop.permute.xlu1 %1016  ;;  %913 = vrot.lane.b32.xlu0 %v909_v49, %s1388_s27 }
 0x520   :  { %v1023_v58 = vmul.f32 %v1495_v26, %v1017_v55 }
 0x521   :  { %1348 = shalt.err (!%p1345_p4)
}
 0x522   :  { %s1391_s6 = smov 128   ;;  %v998_v59 = vmul.f32 %v1594_v57, %v1441_v5  ;;  %v1024_v60 = vmul.f32 %v1513_v31, %v1021_v10  ;;  %v974_v61 = vadd.f32 %v972_v52, %v960_v48  ;;  %v1037_v62 = vmul.f32 %v1531_v40, %v1031_v53  ;;  %s1392_s9 = smov 96   ;;  %v835_v8 = vpop.permute.xlu0 %834 }
 0x523   :  { %1075 = dma.vmem_to_hbm [thread:$0]  %s1070_s30, 256, %s1658_s4, [#allocation5], %s1391_s6, %s1391_s6, %s1382_s0   ;;  %v1025_v63 = vadd.f32 %v1023_v58, %v1011_v56  ;;  %v812_v57 = vmul.f32 %v1592_v54, %v1441_v5  ;;  %v838_v11 = vmul.f32 %v1513_v31, %v835_v8  ;;  %v811_v23 = vmul.f32 %v1609_v22, %v1428_v2 }
 0x524   :  { %v1012_v0 = vadd.f32 %v1010_v51, %v998_v59  ;;  %978 = vrot.lane.b32.xlu0 %v974_v61, %s1389_s28  ;;  %v1035_v1 = vpop.permute.xlu1 %1034  ;;  %vm919_vm6 = vcmask 523520   ;;  %vm984_vm7 = vcmask 785920   ;;  %vm1049_vm8 = vcmask 1048320   ;;  %s1393_s4 = smov [#allocation2]  }
 0x525   :  { %v1039_v3 = vadd.f32 %v1037_v62, %v1025_v63  ;;  %v1038_v6 = vmul.f32 %v1549_v45, %v1035_v1  ;;  %s1057_s10 = sshll.u32 %s1393_s4, 4  ;;  %s1058_s10 = int_to_ptr.vmem [resolvable:$true] %s1057_s10 }
 0x526   :  { %v1026_v4 = vadd.f32 %v1024_v60, %v1012_v0  ;;  %v817_v18 = vpop.permute.xlu0 %816  ;;  %s1357_s11 = scalar_lea.vmem %s1058_s10, 256  ;;  %p1362_p6 = scmp.lt.s32.totalorder %s1058_s10, %s1058_s10 }
 0x527   :  { %v823_v20 = vmul.f32 %v1457_v12, %v817_v18  ;;  %p1358_p5 = scmp.ne.s32.totalorder %s1058_s10, %s1357_s11  ;;  %p1363_p7 = scmp.lt.s32.totalorder %s1357_s11, %s1357_s11 }
 0x528   :  { %v1040_v7 = vadd.f32 %v1038_v6, %v1026_v4  ;;  %1043 = vrot.lane.b32.xlu0 %v1039_v3, %s1392_s9 }
 0x529   :  { %v821_v9 = vpop.permute.xlu1 %820  ;;  %p1364_p8 = por %p1363_p7, %p1362_p6 }
 0x52a   :  { %1045 = vrot.lane.b32.xlu1 %v1040_v7, %s1392_s9  ;;  %v824_v10 = vmul.f32 %v1475_v17, %v821_v9  ;;  %v825_v17 = vadd.f32 %v823_v20, %v811_v23 }
 0x52b   :  { %p1365_p9 = pnand %p1364_p8, %p1358_p5 }
 0x52c   :  { %v826_v13 = vadd.f32 %v824_v10, %v812_v57 }
 0x52e   :  { %v849_v14 = vpop.permute.xlu1 %848  ;;  %v840_v15 = vadd.f32 %v838_v11, %v826_v13 }
 0x52f   :  { %v852_v16 = vmul.f32 %v1549_v45, %v849_v14 }
 0x531   :  { %v854_v19 = vadd.f32 %v852_v16, %v840_v15 }
 0x533   :  { %856 = vst.msk [vmem:[#allocation2 + $0x8] sm:$0xff] %vm24_vm0, %v854_v19  ;;  %v831_v21 = vpop.permute.xlu1 %830 }
 0x534   :  { %v837_v5 = vmul.f32 %v1495_v26, %v831_v21 }
 0x536   :  { %v839_v31 = vadd.f32 %v837_v5, %v825_v17 }
 0x538   :  { %v845_v54 = vpop.permute.xlu1 %844 }
 0x539   :  { %v851_v24 = vmul.f32 %v1531_v40, %v845_v54 }
 0x53b   :  { %v853_v25 = vadd.f32 %v851_v24, %v839_v31 }
 0x53d   :  { %855 = vst.msk [vmem:[#allocation2] sm:$0xff] %vm24_vm0, %v853_v25 }
 0x560   :  { %v916_v45 = vpop.permute.xlu1 %915 }
 0x561   :  { %921 = vst.msk [vmem:[#allocation2 + $0x8] sm:$0xff] %vm919_vm6, %v916_v45 }
 0x571   :  { %v981_v12 = vpop.permute.xlu1 %980 }
 0x572   :  { %986 = vst.msk [vmem:[#allocation2 + $0x8] sm:$0xff] %vm984_vm7, %v981_v12 }
 0x591   :  { %v914_v27 = vpop.permute.xlu0 %913 }
 0x592   :  { %920 = vst.msk [vmem:[#allocation2] sm:$0xff] %vm919_vm6, %v914_v27 }
 0x596   :  { %v979_v28 = vpop.permute.xlu0 %978 }
 0x597   :  { %985 = vst.msk [vmem:[#allocation2] sm:$0xff] %vm984_vm7, %v979_v28 }
 0x59a   :  { %v1044_v2 = vpop.permute.xlu0 %1043 }
 0x59b   :  { %1050 = vst.msk [vmem:[#allocation2] sm:$0xff] %vm1049_vm8, %v1044_v2 }
 0x59c   :  { %v1046_v26 = vpop.permute.xlu1 %1045 }
 0x59d   :  { %1051 = vst.msk [vmem:[#allocation2 + $0x8] sm:$0xff] %vm1049_vm8, %v1046_v26 }
 0x59e   :  { %1368 = shalt.err (!%p1365_p9)
}
 0x59f   :  { %1063 = dma.vmem_to_hbm [thread:$0]  %s1058_s10, 256, %s1657_s3, [#allocation3], %s1391_s6, %s1391_s6, %s1382_s0  }
 0x5a0   :  { %1377 = dma.done.wait [#allocation3], 256  }
 0x5a1   :  { %1378 = vsyncadd [#allocation3], 4294967040 }
 0x5a2   :  { %1379 = dma.done.wait [#allocation5], 256  }
 0x5a3   :  { %1380 = vsyncadd [#allocation5], 4294967040 }
 0x5a4   :  { %1082 = vsyncpa [#allocation3], 1 }
 0x5a5   :  { %1083 = vsyncpa [#allocation5], 1 }

</bundles_post_ra>
